<compile_context>
chip_gen: v7x
topology: tpu7x:2x2x1
jax: 0.10.0
libtpu: 0.0.40
codegen_flags: <defaults>
</compile_context>

<pallas_src>
import jax
import jax.numpy as jnp
from jax.experimental import pallas as pl
from jax.experimental.pallas import tpu as pltpu


def conv1x1_add_kernel(x_ref, w_ref, b_ref, res_ref, o_ref):
    # x_ref:   (Cin, M)   input channels x pixels
    # w_ref:   (Cout, Cin)
    # b_ref:   (Cout, 1)
    # res_ref: (Cout, M)  residual to add (aliased with o_ref)
    # o_ref:   (Cout, M)
    acc = jnp.dot(w_ref[...], x_ref[...], preferred_element_type=jnp.float32)
    o_ref[...] = (acc + b_ref[...] + res_ref[...]).astype(o_ref.dtype)


def conv2d_1x1_add(x_nchw, w, b, res_nchw):
    """x_nchw: (1, Cin, H, W); w: (Cout, Cin); b: (Cout,); res_nchw: (1, Cout, H, W)."""
    N, Cin, H, W = x_nchw.shape
    Cout = w.shape[0]
    assert N == 1, "channel-major fast path assumes N == 1 (pure reshape)"
    M = N * H * W

    # Pure reshapes (N == 1): NCHW -> (C, H*W).  No transposes anywhere.
    x2d = x_nchw.reshape(Cin, M)
    r2d = res_nchw.reshape(Cout, M)
    b2d = b.reshape(Cout, 1)        # broadcasts along the 784-lane axis

    flops = 2 * M * Cin * Cout
    bytes_accessed = 4 * (Cin * M + Cout * Cin + Cout + 2 * Cout * M)

    vmem = pl.BlockSpec(memory_space=pltpu.MemorySpace.VMEM)
    out2d = pl.pallas_call(
        conv1x1_add_kernel,
        out_shape=jax.ShapeDtypeStruct((Cout, M), jnp.float32),
        in_specs=[vmem, vmem, vmem, vmem],
        out_specs=vmem,
        # residual (input 3) shares shape/dtype with the output -> reuse buffer
        input_output_aliases={3: 0},
        cost_estimate=pl.CostEstimate(
            flops=flops, transcendentals=0, bytes_accessed=bytes_accessed),
    )(x2d, w, b2d, r2d)

    # (Cout, H*W) -> NCHW (pure reshape, N == 1)
    return out2d.reshape(N, Cout, H, W)


def reference(x_nchw, w, b, res_nchw):
    # plain-JAX reference for sanity check
    y = jnp.einsum("nchw,oc->nohw", x_nchw, w) + b[None, :, None, None]
    return y + res_nchw


if __name__ == "__main__":
    key = jax.random.PRNGKey(0)
    k1, k2, k3, k4 = jax.random.split(key, 4)

    N, Cin, Cout, H, W = 1, 40, 21, 28, 28

    # Deterministic "parameters" (Conv2d(40, 21, 1x1) weight + bias shapes).
    bound = 1.0 / (Cin ** 0.5)
    w = jax.random.uniform(k1, (Cout, Cin), jnp.float32, -bound, bound)
    b = jax.random.uniform(k2, (Cout,), jnp.float32, -bound, bound)

    # Deterministic example inputs consistent with the module's forward.
    x40 = jax.random.normal(k3, (N, Cin, H, W), jnp.float32)
    x193 = jax.random.normal(k4, (N, Cout, H, W), jnp.float32)

    out = conv2d_1x1_add(x40, w, b, x193)
    out = jax.block_until_ready(out)

    ref = reference(x40, w, b, x193)
    assert out.shape == (N, Cout, H, W)
    assert jnp.allclose(out, ref, atol=1e-4, rtol=1e-4)

    print("KERNEL_OK")
</pallas_src>

<mosaic_0001>
module attributes {stable_mosaic.version = 11 : i64} {
  func.func @conv1x1_add_kernel(%arg0: memref<40x784xf32, #tpu.memory_space<vmem>>, %arg1: memref<21x40xf32, #tpu.memory_space<vmem>>, %arg2: memref<21x1xf32, #tpu.memory_space<vmem>>, %arg3: memref<21x784xf32, #tpu.memory_space<vmem>>, %arg4: memref<21x784xf32, #tpu.memory_space<vmem>>) attributes {dimension_semantics = [], scalar_prefetch = 0 : i64, scratch_operands = 0 : i64, tpu.core_type = #tpu.core_type<tc>} {
    %c0 = arith.constant 0 : index
    %c0_0 = arith.constant 0 : index
    %0 = vector.load %arg1[%c0, %c0_0] : memref<21x40xf32, #tpu.memory_space<vmem>>, vector<21x40xf32>
    %c0_1 = arith.constant 0 : index
    %c0_2 = arith.constant 0 : index
    %1 = vector.load %arg0[%c0_1, %c0_2] : memref<40x784xf32, #tpu.memory_space<vmem>>, vector<40x784xf32>
    %cst = arith.constant dense<0.000000e+00> : vector<21x784xf32>
    %2 = tpu.matmul %0, %1, %cst {dimension_numbers = #tpu.dot_dimension_numbers<[1], [0], [0], [1], [0, 0, 1, 1], [], []>} : vector<21x40xf32>, vector<40x784xf32>, vector<21x784xf32> -> vector<21x784xf32>
    %c0_3 = arith.constant 0 : index
    %c0_4 = arith.constant 0 : index
    %3 = vector.load %arg2[%c0_3, %c0_4] : memref<21x1xf32, #tpu.memory_space<vmem>>, vector<21x1xf32>
    %4 = vector.broadcast %3 : vector<21x1xf32> to vector<21x784xf32>
    %5 = arith.addf %2, %4 : vector<21x784xf32>
    %c0_5 = arith.constant 0 : index
    %c0_6 = arith.constant 0 : index
    %6 = vector.load %arg3[%c0_5, %c0_6] : memref<21x784xf32, #tpu.memory_space<vmem>>, vector<21x784xf32>
    %7 = arith.addf %5, %6 : vector<21x784xf32>
    %c0_7 = arith.constant 0 : index
    %c0_8 = arith.constant 0 : index
    %8 = vector.load %arg4[%c0_7, %c0_8] : memref<21x784xf32, #tpu.memory_space<vmem>>, vector<21x784xf32>
    tpu.vector_store %arg4[%c0_7, %c0_8], %7 {strides = array<i32>} : memref<21x784xf32, #tpu.memory_space<vmem>>, vector<21x784xf32>,
    return
  }
}

</mosaic_0001>

<bundles_post_ra>
// kernel: tpu_custom_call.1
= control target key start
LH: loop header
LB: loop body
LE: loop exit
PB: predicated region body
PF: predicated region fallthrough
CT: control target
= control target key end

     0   :  { %9 = vsyncpa [#allocation3], 0  ;;  %s876_s0 = inlined_call_operand.vmem [shape: f32[40,784], index: 0, kind: input, shape index: {}]   ;;  %s877_s1 = inlined_call_operand.vmem [shape: f32[21,40], index: 1, kind: input, shape index: {}]   ;;  %s878_s2 = inlined_call_operand.vmem [shape: f32[21,1], index: 2, kind: input, shape index: {}]   ;;  %s879_s3 = inlined_call_operand.hbm [shape: f32[21,784], index: 3, kind: input, shape index: {}, may-alias: {3,4}]   ;;  %s880_s4 = inlined_call_operand.hbm [shape: f32[21,784], index: 4, kind: output, shape index: {}, may-alias: {3,4}]  }
   0x1   :  { %10 = vsyncpa [#allocation4], 0  ;;  %s636_s15 = smov [#allocation2]   ;;  %s588_s19 = scalar_lea.hbm %s879_s3, 2688 }
   0x2   :  { %s22_s16 = sshll.u32 %s636_s15, 4  ;;  %p589_p0 = scmp.ne.s32.totalorder %s879_s3, %s588_s19  ;;  %s23_s16 = int_to_ptr.vmem [resolvable:$true] %s22_s16 }
   0x3   :  { %p592_p1 = scmp.lt.u32.totalorder %s588_s19, %s879_s3 }
   0x5   :  { %p594_p2 = pnand %p592_p1, %p589_p0 }
   0x7   :  { %597 = shalt.err (!%p594_p2)
}
   0x8   :  { %s598_s24 = scalar_lea.vmem %s23_s16, 2688  ;;  %p603_p4 = scmp.lt.s32.totalorder %s23_s16, %s23_s16 }
   0x9   :  { %p599_p3 = scmp.ne.s32.totalorder %s23_s16, %s598_s24  ;;  %p604_p5 = scmp.lt.s32.totalorder %s598_s24, %s598_s24 }
   0xb   :  { %p605_p6 = por %p604_p5, %p603_p4 }
   0xd   :  { %p606_p7 = pnand %p605_p6, %p599_p3 }
   0xf   :  { %609 = shalt.err (!%p606_p7)
}
  0x10   :  { %s637_s25 = smov 896   ;;  %s638_s26 = smov 56  }
  0x11   :  { %28 = dma.hbm_to_vmem [thread:$0]  %s879_s3, 2688, %s23_s16, [#allocation3], %s637_s25, %s637_s25, %s638_s26  }
  0x12   :  { %632 = dma.done.wait [#allocation3], 2688  }
  0x13   :  { %633 = vsyncadd [#allocation3], 4294964608  ;;  %v639_v0 = vmov 0.0   ;;  %v640_v1 = vmov 0   ;;  %v36_v2 = vld [vmem:[%s876_s0 + $0x8] sm:$0xff]  ;;  %v43_v3 = vld [vmem:[%s876_s0 + $0x40] sm:$0xff] }
  0x14   :  { %162 = vmatprep.mubr.f32.mxu0 %v639_v0  ;;  %245 = vmatprep.mubr.f32.mxu1 %v639_v0  ;;  %v35_v4 = vld [vmem:[%s876_s0] sm:$0xff]  ;;  %v548_v5 = vpack.c.bf16 %v43_v3, %v36_v2  ;;  %v42_v6 = vld [vmem:[%s876_s0 + $0x38] sm:$0xff]  ;;  %v45_v8 = vld [vmem:[%s876_s0 + $0x50] sm:$0xff]  ;;  %vm88_vm0 = vcmask 326656   ;;  %v641_v48 = vmov 0.0|0.0   ;;  %vm642_vm1 = vmmov 0  }
  0x15   :  { %586 = vset.pattern.permute.xlu0 %v640_v1  ;;  %587 = vset.pattern.permute.xlu1 %v640_v1  ;;  %v38_v7 = vld [vmem:[%s876_s0 + $0x18] sm:$0xff]  ;;  %v550_v9 = vpack.c.bf16 %v42_v6, %v35_v4  ;;  %v37_v11 = vld [vmem:[%s876_s0 + $0x10] sm:$0xff]  ;;  %v44_v12 = vld [vmem:[%s876_s0 + $0x48] sm:$0xff]  ;;  %vm475_vm2 = vcmask 130048   ;;  %vm490_vm3 = vcmask 126976  }
  0x16   :  { %v556_v10 = vpack.c.bf16 %v45_v8, %v38_v7  ;;  %v50_v13 = vld [vmem:[%s876_s0 + $0x78] sm:$0xff]  ;;  %549 = vmatprep.subr.bf16.mxu0 %v548_v5  ;;  %v558_v14 = vpack.c.bf16 %v44_v12, %v37_v11  ;;  %v57_v15 = vld [vmem:[%s876_s0 + $0xb0] sm:$0xff]  ;;  %v56_v17 = vld [vmem:[%s876_s0 + $0xa8] sm:$0xff] }
  0x17   :  { %v49_v16 = vld [vmem:[%s876_s0 + $0x70] sm:$0xff]  ;;  %551 = vmatpush1.bf16.msra.mxu0 %v550_v9  ;;  %v552_v18 = vpack.c.bf16 %v57_v15, %v50_v13  ;;  %v52_v20 = vld [vmem:[%s876_s0 + $0x88] sm:$0xff]  ;;  %v59_v21 = vld [vmem:[%s876_s0 + $0xc0] sm:$0xff] }
  0x18   :  { %557 = vmatprep.subr.bf16.mxu1 %v556_v10  ;;  %v554_v19 = vpack.c.bf16 %v56_v17, %v49_v16  ;;  %v51_v22 = vld [vmem:[%s876_s0 + $0x80] sm:$0xff]  ;;  %v560_v23 = vpack.c.bf16 %v59_v21, %v52_v20  ;;  %v58_v24 = vld [vmem:[%s876_s0 + $0xb8] sm:$0xff]  ;;  %v64_v26 = vld [vmem:[%s876_s0 + $0xe8] sm:$0xff] }
  0x19   :  { %559 = vmatpush1.bf16.msra.mxu1 %v558_v14  ;;  %553 = vmatprep.subr.bf16.mxu0 %v552_v18  ;;  %v562_v25 = vpack.c.bf16 %v58_v24, %v51_v22  ;;  %v66_v27 = vld [vmem:[%s876_s0 + $0xf8] sm:$0xff]  ;;  %v40_v28 = vld [vmem:[%s876_s0 + $0x28] sm:$0xff]  ;;  %v47_v29 = vld [vmem:[%s876_s0 + $0x60] sm:$0xff] }
  0x1a   :  { %561 = vmatprep.subr.bf16.mxu1 %v560_v23  ;;  %v39_v30 = vld [vmem:[%s876_s0 + $0x20] sm:$0xff]  ;;  %v46_v31 = vld [vmem:[%s876_s0 + $0x58] sm:$0xff]  ;;  %v41_v33 = vld [vmem:[%s876_s0 + $0x30] sm:$0xff]  ;;  %v564_v37 = vpack.c.bf16 %v47_v29, %v40_v28 }
  0x1b   :  { %555 = vmatpush1.bf16.msra.mxu0 %v554_v19  ;;  %v63_v32 = vld [vmem:[%s876_s0 + $0xe0] sm:$0xff]  ;;  %v48_v34 = vld [vmem:[%s876_s0 + $0x68] sm:$0xff]  ;;  %v65_v36 = vld [vmem:[%s876_s0 + $0xf0] sm:$0xff]  ;;  %v566_v38 = vpack.c.bf16 %v46_v31, %v39_v30 }
  0x1c   :  { %106 = vmatprep.subr.mxu0 %v64_v26  ;;  %v32_v35 = vld [vmem:[%s877_s1] sm:$0xff]  ;;  %v54_v39 = vld [vmem:[%s876_s0 + $0x98] sm:$0xff]  ;;  %v61_v40 = vld [vmem:[%s876_s0 + $0xd0] sm:$0xff]  ;;  %v573_v41 = vpack.c.bf16 %v48_v34, %v41_v33 }
  0x1d   :  { %563 = vmatpush1.bf16.msra.mxu1 %v562_v25  ;;  %v53_v42 = vld [vmem:[%s876_s0 + $0x90] sm:$0xff]  ;;  %v60_v43 = vld [vmem:[%s876_s0 + $0xc8] sm:$0xff]  ;;  %v55_v44 = vld [vmem:[%s876_s0 + $0xa0] sm:$0xff]  ;;  %v568_v47 = vpack.c.bf16 %v61_v40, %v54_v39 }
  0x1e   :  { %189 = vmatprep.subr.mxu1 %v66_v27  ;;  %v62_v45 = vld [vmem:[%s876_s0 + $0xd8] sm:$0xff]  ;;  %v33_v46 = vld [vmem:[%s877_s1 + $0x8] sm:$0xff]  ;;  %v570_v49 = vpack.c.bf16 %v60_v43, %v53_v42  ;;  %v34_v51 = vld [vmem:[%s877_s1 + $0x10] sm:$0x1f] }
  0x1f   :  { %107 = vmatpush1.msra.mxu0 %v63_v32  ;;  %v576_v50 = vpack.c.bf16 %v62_v45, %v55_v44  ;;  %v68_v52 = vld [vmem:[%s876_s0 + $0x108] sm:$0xff]  ;;  %v67_v53 = vld [vmem:[%s876_s0 + $0x100] sm:$0xff]  ;;  %v69_v54 = vld [vmem:[%s876_s0 + $0x110] sm:$0xff] }
  0x20   :  { %509 = vmatmul.mubr.msk.f32.vlgmr.msra.gmra.mrb[0].mxu0 %vm88_vm0, %v32_v35  ;;  %565 = vmatprep.subr.bf16.mxu0 %v564_v37  ;;  %v70_v55 = vld [vmem:[%s878_s2] sm:$0xff]  ;;  %v72_v56 = vld [vmem:[%s878_s2 + $0x10] sm:$0x1f]  ;;  %v71_v57 = vld [vmem:[%s878_s2 + $0x8] sm:$0xff]  ;;  %s643_s2 = smov [#allocation5]  }
  0x21   :  { %190 = vmatpush1.msra.mxu1 %v65_v36  ;;  %567 = vmatpush1.bf16.msra.mxu0 %v566_v38  ;;  %v427_v60 = vld [vmem:[#allocation2] sm:$0xff]  ;;  %v428_v63 = vld [vmem:[#allocation2 + $0x8] sm:$0xff]  ;;  %v429_v2 = vld [vmem:[#allocation2 + $0x10] sm:$0xff]  ;;  %s497_s3 = sshll.u32 %s643_s2, 4  ;;  %s498_s3 = int_to_ptr.vmem [resolvable:$true] %s497_s3 }
  0x22   :  { %512 = vmatmul.mubr.msk.f32.vlgmr.msra.gmra.mrb[0].mxu1 %vm88_vm0, %v32_v35  ;;  %572 = vmatprep.subr.bf16.mxu1 %v641_v48  ;;  %v430_v5 = vld [vmem:[#allocation2 + $0x18] sm:$0xff]  ;;  %v435_v16 = vld [vmem:[#allocation2 + $0x40] sm:$0xff]  ;;  %v436_v18 = vld [vmem:[#allocation2 + $0x48] sm:$0xff]  ;;  %s610_s8 = scalar_lea.vmem %s498_s3, 2688  ;;  %p615_p9 = scmp.lt.s32.totalorder %s498_s3, %s498_s3 }
  0x23   :  { %574 = vmatpush3.bf16.msra.mxu1 %v573_v41  ;;  %168 = vmatprep.mubr.f32.mxu0 %v639_v0  ;;  %v434_v12 = vld [vmem:[#allocation2 + $0x38] sm:$0xff]  ;;  %v437_v22 = vld [vmem:[#allocation2 + $0x50] sm:$0xff]  ;;  %v444_v39 = vld [vmem:[#allocation2 + $0x88] sm:$0x1f]  ;;  %p611_p8 = scmp.ne.s32.totalorder %s498_s3, %s610_s8  ;;  %p616_p10 = scmp.lt.s32.totalorder %s610_s8, %s610_s8 }
  0x24   :  { %510 = vmatmul.mubr.msk.f32.gmra.mrb[2].mxu0 %vm88_vm0, %v33_v46  ;;  %251 = vmatprep.mubr.f32.mxu1 %v639_v0  ;;  %v441_v29 = vld [vmem:[#allocation2 + $0x70] sm:$0x1f]  ;;  %v442_v33 = vld [vmem:[#allocation2 + $0x78] sm:$0x1f]  ;;  %v431_v45 = vld [vmem:[#allocation2 + $0x20] sm:$0xff] }
  0x25   :  { %569 = vmatprep.subr.bf16.mxu0 %v568_v47  ;;  %575 = vmatprep.subr.bf16.mxu1 %v641_v48  ;;  %p617_p11 = por %p616_p10, %p615_p9 }
  0x26   :  { %513 = vmatmul.mubr.msk.f32.gmra.mrb[2].mxu1 %vm88_vm0, %v33_v46  ;;  %571 = vmatpush1.bf16.msra.mxu0 %v570_v49  ;;  %v432_v49 = vld [vmem:[#allocation2 + $0x28] sm:$0xff] }
  0x27   :  { %577 = vmatpush3.bf16.msra.mxu1 %v576_v50  ;;  %174 = vmatprep.mubr.f32.mxu0 %v639_v0  ;;  %p618_p12 = pnand %p617_p11, %p611_p8 }
  0x28   :  { %511 = vmatmul.mubr.msk.f32.gmra.mrb[4].mxu0 %vm88_vm0, %v34_v51  ;;  %257 = vmatprep.mubr.f32.mxu1 %v639_v0 }
  0x29   :  { %272 = vmatprep.subr.mxu0 %v68_v52  ;;  %537 = vmatprep.subr.mxu1 %v639_v0 }
  0x2a   :  { %514 = vmatmul.mubr.msk.f32.gmra.mrb[4].mxu1 %vm88_vm0, %v34_v51  ;;  %273 = vmatpush1.msra.mxu0 %v67_v53 }
  0x2b   :  { %538 = vmatpush3.msra.mxu1 %v69_v54  ;;  %328 = vmatprep.mubr.f32.mxu0 %v639_v0 }
  0x2c   :  { %515 = vmatmul.mubr.msk.f32.vlgmr.msra.gmra.mrb[6].mxu0 %vm88_vm0, %v32_v35  ;;  %539 = vmatprep.mubr.msk.f32.mxu1 %vm642_vm1, %v639_v0 }
  0x2d   :  { %334 = vmatprep.mubr.f32.mxu0 %v639_v0  ;;  %75 = vperm.xlu0 %586, %v70_v55  }
  0x2e   :  { %540 = vmatmul.mubr.msk.f32.vlgmr.msra.gmra.mrb[6].mxu1 %vm88_vm0, %v32_v35  ;;  %85 = vperm.xlu1 %587, %v72_v56   ;;  %v443_v35 = vld [vmem:[#allocation2 + $0x80] sm:$0x1f] }
  0x2f   :  { %542 = vmatprep.mubr.msk.f32.mxu1 %vm642_vm1, %v639_v0 }
  0x30   :  { %516 = vmatmul.mubr.msk.f32.gmra.mrb[8].mxu0 %vm88_vm0, %v33_v46 }
  0x31   :  { %340 = vmatprep.mubr.f32.mxu0 %v639_v0  ;;  %80 = vperm.xlu0 %586, %v71_v57  }
  0x32   :  { %543 = vmatmul.mubr.msk.f32.gmra.mrb[8].mxu1 %vm88_vm0, %v33_v46 }
  0x33   :  { %545 = vmatprep.mubr.msk.f32.mxu1 %vm642_vm1, %v639_v0 }
  0x34   :  { %517 = vmatmul.mubr.msk.f32.gmra.mrb[10].mxu0 %vm88_vm0, %v34_v51 }
  0x36   :  { %546 = vmatmul.mubr.msk.f32.gmra.mrb[10].mxu1 %vm88_vm0, %v34_v51  ;;  %v433_v51 = vld [vmem:[#allocation2 + $0x30] sm:$0xff] }
  0xac   :  { %v832_v58 = vpop.permute.xlu0 %75 }
  0xad   :  { %v843_v23 = vpop.permute.xlu1 %85 }
  0xb0   :  { %v837_v6 = vpop.permute.xlu0 %80 }
  0xf3   :  { %v164_v59 = vpop.f32.mrb[0].mxu0 }
  0xf4   :  { %v165_v61 = vadd.f32 %v164_v59, %v832_v58  ;;  %v166_v62 = vpop.f32.mrb[1].mxu0 }
  0xf5   :  { %v247_v1 = vpop.f32.mrb[0].mxu1  ;;  %v167_v3 = vadd.f32 %v166_v62, %v832_v58 }
  0xf6   :  { %v248_v4 = vadd.f32 %v247_v1, %v832_v58  ;;  %v249_v0 = vpop.f32.mrb[1].mxu1  ;;  %v448_v7 = vadd.f32 %v427_v60, %v165_v61  ;;  %v438_v60 = vld [vmem:[#allocation2 + $0x58] sm:$0xff] }
  0xf7   :  { %v250_v8 = vadd.f32 %v249_v0, %v832_v58  ;;  %v449_v9 = vadd.f32 %v428_v63, %v167_v3  ;;  %v170_v11 = vpop.f32.mrb[2].mxu0  ;;  %v439_v63 = vld [vmem:[#allocation2 + $0x60] sm:$0xff] }
  0xf8   :  { %v450_v10 = vadd.f32 %v429_v2, %v248_v4  ;;  %469 = vst [vmem:[#allocation5] sm:$0xff] %v448_v7  ;;  %v171_v14 = vadd.f32 %v170_v11, %v837_v6  ;;  %v172_v15 = vpop.f32.mrb[3].mxu0  ;;  %v440_v2 = vld [vmem:[#allocation2 + $0x68] sm:$0xff] }
  0xf9   :  { %v451_v13 = vadd.f32 %v430_v5, %v250_v8  ;;  %v253_v17 = vpop.f32.mrb[2].mxu1  ;;  %470 = vst [vmem:[#allocation5 + $0x8] sm:$0xff] %v449_v9  ;;  %v173_v19 = vadd.f32 %v172_v15, %v837_v6  ;;  %v445_v9 = vld [vmem:[#allocation2 + $0x90] sm:$0x1f] }
  0xfa   :  { %471 = vst [vmem:[#allocation5 + $0x10] sm:$0xff] %v450_v10  ;;  %v254_v20 = vadd.f32 %v253_v17, %v837_v6  ;;  %v255_v21 = vpop.f32.mrb[3].mxu1  ;;  %v455_v24 = vadd.f32 %v434_v12, %v171_v14  ;;  %v446_v10 = vld [vmem:[#allocation2 + $0x98] sm:$0x1f]  ;;  %v447_v14 = vld [vmem:[#allocation2 + $0xa0] sm:$0x1f] }
  0xfb   :  { %472 = vst [vmem:[#allocation5 + $0x18] sm:$0xff] %v451_v13  ;;  %v256_v25 = vadd.f32 %v255_v21, %v837_v6  ;;  %v456_v26 = vadd.f32 %v435_v16, %v173_v19  ;;  %v176_v28 = vpop.f32.mrb[4].mxu0 }
  0xfc   :  { %v457_v27 = vadd.f32 %v436_v18, %v254_v20  ;;  %477 = vst [vmem:[#allocation5 + $0x38] sm:$0xff] %v455_v24  ;;  %v177_v31 = vadd.f32 %v176_v28, %v843_v23  ;;  %v178_v32 = vpop.f32.mrb[5].mxu0 }
  0xfd   :  { %v458_v30 = vadd.f32 %v437_v22, %v256_v25  ;;  %v259_v34 = vpop.f32.mrb[4].mxu1  ;;  %478 = vst [vmem:[#allocation5 + $0x40] sm:$0xff] %v456_v26  ;;  %v179_v36 = vadd.f32 %v178_v32, %v843_v23 }
  0xfe   :  { %479 = vst [vmem:[#allocation5 + $0x48] sm:$0xff] %v457_v27  ;;  %v260_v37 = vadd.f32 %v259_v34, %v843_v23  ;;  %v261_v38 = vpop.f32.mrb[5].mxu1  ;;  %v462_v40 = vadd.f32 %v441_v29, %v177_v31 }
  0xff   :  { %480 = vst [vmem:[#allocation5 + $0x50] sm:$0xff] %v458_v30  ;;  %v262_v41 = vadd.f32 %v261_v38, %v843_v23  ;;  %v463_v42 = vadd.f32 %v442_v33, %v179_v36  ;;  %v330_v44 = vpop.f32.mrb[6].mxu0 }
 0x100   :  { %v464_v43 = vadd.f32 %v443_v35, %v260_v37  ;;  %484 = vst [vmem:[#allocation5 + $0x70] sm:$0x1f] %v462_v40  ;;  %v331_v47 = vadd.f32 %v330_v44, %v832_v58  ;;  %v332_v48 = vpop.f32.mrb[7].mxu0 }
 0x101   :  { %v465_v46 = vadd.f32 %v444_v39, %v262_v41  ;;  %v413_v50 = vpop.f32.mrb[6].mxu1  ;;  %485 = vst [vmem:[#allocation5 + $0x78] sm:$0x1f] %v463_v42  ;;  %v333_v52 = vadd.f32 %v332_v48, %v832_v58 }
 0x102   :  { %486 = vst [vmem:[#allocation5 + $0x80] sm:$0x1f] %v464_v43  ;;  %v414_v53 = vadd.f32 %v413_v50, %v832_v58  ;;  %v541_v54 = vpop.f32.mrb[7].mxu1  ;;  %v452_v55 = vadd.f32 %v431_v45, %v331_v47 }
 0x103   :  { %487 = vst [vmem:[#allocation5 + $0x88] sm:$0x1f] %v465_v46  ;;  %v453_v56 = vadd.f32 %v432_v49, %v333_v52  ;;  %v336_v59 = vpop.f32.mrb[8].mxu0 }
 0x104   :  { %v454_v57 = vadd.f32 %v433_v51, %v414_v53  ;;  %473 = vst [vmem:[#allocation5 + $0x20] sm:$0xff] %v452_v55  ;;  %v337_v61 = vadd.f32 %v336_v59, %v837_v6  ;;  %v338_v62 = vpop.f32.mrb[9].mxu0 }
 0x105   :  { %v418_v1 = vpop.f32.mrb[8].mxu1  ;;  %474 = vst [vmem:[#allocation5 + $0x28] sm:$0xff] %v453_v56  ;;  %v339_v58 = vadd.f32 %v338_v62, %v837_v6 }
 0x106   :  { %476 = vst.msk [vmem:[#allocation5 + $0x30] sm:$0xff] %vm475_vm2, %v454_v57  ;;  %v419_v3 = vadd.f32 %v418_v1, %v837_v6  ;;  %v544_v4 = vpop.f32.mrb[9].mxu1  ;;  %v459_v0 = vadd.f32 %v438_v60, %v337_v61 }
 0x107   :  { %v460_v5 = vadd.f32 %v439_v63, %v339_v58  ;;  %v342_v8 = vpop.f32.mrb[10].mxu0 }
 0x108   :  { %v461_v7 = vadd.f32 %v440_v2, %v419_v3  ;;  %481 = vst [vmem:[#allocation5 + $0x58] sm:$0xff] %v459_v0  ;;  %v343_v11 = vadd.f32 %v342_v8, %v843_v23  ;;  %v344_v12 = vpop.f32.mrb[11].mxu0 }
 0x109   :  { %v423_v13 = vpop.f32.mrb[10].mxu1  ;;  %482 = vst [vmem:[#allocation5 + $0x60] sm:$0xff] %v460_v5  ;;  %v345_v6 = vadd.f32 %v344_v12, %v843_v23 }
 0x10a   :  { %483 = vst.msk [vmem:[#allocation5 + $0x68] sm:$0xff] %vm475_vm2, %v461_v7  ;;  %v424_v15 = vadd.f32 %v423_v13, %v843_v23  ;;  %v547_v16 = vpop.f32.mrb[11].mxu1  ;;  %v466_v17 = vadd.f32 %v445_v9, %v343_v11 }
 0x10b   :  { %v467_v18 = vadd.f32 %v446_v10, %v345_v6 }
 0x10c   :  { %v468_v19 = vadd.f32 %v447_v14, %v424_v15  ;;  %488 = vst [vmem:[#allocation5 + $0x90] sm:$0x1f] %v466_v17 }
 0x10d   :  { %489 = vst [vmem:[#allocation5 + $0x98] sm:$0x1f] %v467_v18 }
 0x10e   :  { %491 = vst.msk [vmem:[#allocation5 + $0xa0] sm:$0x1f] %vm490_vm3, %v468_v19 }
 0x10f   :  { %621 = shalt.err (!%p618_p12)
}
 0x110   :  { %s622_s11 = scalar_lea.hbm %s880_s4, 2688 }
 0x111   :  { %p623_p13 = scmp.ne.s32.totalorder %s880_s4, %s622_s11  ;;  %p626_p0 = scmp.lt.u32.totalorder %s622_s11, %s880_s4 }
 0x113   :  { %p628_p1 = pnand %p626_p0, %p623_p13 }
 0x115   :  { %631 = shalt.err (!%p628_p1)
}
 0x116   :  { %503 = dma.vmem_to_hbm [thread:$0]  %s498_s3, 2688, %s880_s4, [#allocation4], %s637_s25, %s637_s25, %s638_s26  }
 0x117   :  { %634 = dma.done.wait [#allocation4], 2688  }
 0x118   :  { %635 = vsyncadd [#allocation4], 4294964608 }
 0x119   :  { %507 = vsyncpa [#allocation3], 1 }
 0x11a   :  { %508 = vsyncpa [#allocation4], 1 }

</bundles_post_ra>
